<compile_context>
chip_gen: v7x
topology: tpu7x:2x2x1
jax: 0.10.0
libtpu: 0.0.40
codegen_flags: <defaults>
</compile_context>

<pallas_src>
import jax
import jax.numpy as jnp
from jax.experimental import pallas as pl
from jax.experimental.pallas import tpu as pltpu


# In+out HBM bytes per grid step.  8-16 MiB amortizes per-step overhead even on
# v7x's 3.2 TB/s HBM; on v5e/v6e (0.8-1.4 TB/s) it is comfortably overhead-free.
_TARGET_STEP_BYTES = 16 << 20
# Budget for the double-buffered in/out blocks themselves.
_BLOCK_BYTES_BUDGET = 40 << 20
# Scoped-VMEM request cap: leave headroom under v7x's 64 MiB physical VMEM.
_VMEM_LIMIT_CAP = 48 << 20


def _cdiv(a, b):
    return -(-a // b)


def _vmem_limit(block_bytes_needed):
    # Request what the double-buffered blocks need plus modest headroom; the
    # 16 MiB floor is <= every generation's default scoped limit (harmless).
    limit = int(min(max(block_bytes_needed + (2 << 20), 16 << 20),
                    _VMEM_LIMIT_CAP))
    if block_bytes_needed > limit:
        # Degenerate un-chunkable shapes: ask for what we need and let the
        # larger-VMEM generations absorb it.
        # TODO(synk): also chunk the seq axis for such extreme shapes.
        limit = int(block_bytes_needed + (2 << 20))
    return limit


def _prefer_divisor(total, tile, step, min_frac=0.5):
    """Snap `tile` (a multiple of `step`) down to a divisor of `total`.

    A dividing tile removes the masked ragged last block; an even number of
    resulting steps additionally balances v7x's two TensorCores.  Never
    shrinks the tile below `min_frac * tile`.
    """
    tile = max(step, (tile // step) * step)
    lo = max(step, int(tile * min_frac))
    for want_even in (True, False):
        t = tile
        while t >= lo:
            if total % t == 0 and ((total // t) % 2 == 0 or not want_even):
                return t
            t -= step
    return tile


# ----------------------------------------------------------------------------
# Kernels: two direct stores into the output window, no temporary.
# ----------------------------------------------------------------------------
def _concat_flat_kernel(prompt_ref, x_ref, o_ref):
    """prompt_ref: (1, P*D); x_ref: (bt, S*D); o_ref: (bt, (P+S)*D)."""
    lp = prompt_ref.shape[-1]
    bt = o_ref.shape[0]
    o_ref[:, :lp] = jnp.broadcast_to(prompt_ref[...], (bt, lp))
    o_ref[:, lp:] = x_ref[...]


def _concat_chunked_kernel(prompt_ref, x_ref, o_ref):
    """prompt_ref: (P, dc); x_ref: (bt, S, dc); o_ref: (bt, P+S, dc)."""
    p, dc = prompt_ref.shape
    bt = o_ref.shape[0]
    o_ref[:, :p, :] = jnp.broadcast_to(prompt_ref[...][None], (bt, p, dc))
    o_ref[:, p:, :] = x_ref[...]


# ----------------------------------------------------------------------------
# Layout 1: lane-dense flattened (B, (P+S)*D) — for D not a multiple of 128.
# ----------------------------------------------------------------------------
def _forward_flat(prompt, x, out_dtype, target_step_bytes):
    P, D = prompt.shape
    B, S, _ = x.shape
    itemsize = jnp.dtype(out_dtype).itemsize
    l_p, l_in = P * D, S * D
    l_out = l_p + l_in
    row_bytes = (l_in + l_out) * itemsize          # in + out bytes per batch row

    bt = max(1, min(B, target_step_bytes // row_bytes))
    if B > 8:
        # Keep >= ~4 grid steps (DMA overlap + v7x megacore split), never fewer
        # than 8 sublane rows per block, 8-row aligned, preferably dividing B.
        bt = min(bt, max(8, 8 * _cdiv(_cdiv(B, 4), 8)))
        bt = max(8, (bt // 8) * 8)
        bt = _prefer_divisor(B, bt, step=8)
    else:
        bt = B          # tiny batch: a single (partial-sublane) step is fine
    n_bt = _cdiv(B, bt)

    p_flat = prompt.reshape(1, l_p)
    x_flat = x.reshape(B, l_in)

    vmem_needed = 2 * (bt * row_bytes + l_p * itemsize)
    bytes_accessed = (B * l_in + l_p + B * l_out) * itemsize
    cost = pl.CostEstimate(flops=0, transcendentals=0,
                           bytes_accessed=int(bytes_accessed))

    grid_spec = pltpu.PrefetchScalarGridSpec(
        num_scalar_prefetch=0,
        grid=(n_bt,),
        in_specs=[
            # Batch-invariant prompt block: its index_map is constant so Pallas
            # DMAs it once and reuses it.  The default double-buffer only costs
            # l_p extra bytes (KBs), so we keep the plain BlockSpec instead of
            # relying on pipeline_mode=pl.Buffered(1).
            pl.BlockSpec((1, l_p), lambda i: (0, 0)),
            pl.BlockSpec((bt, l_in), lambda i: (i, 0)),
        ],
        out_specs=pl.BlockSpec((bt, l_out), lambda i: (i, 0)),
    )

    out_flat = pl.pallas_call(
        _concat_flat_kernel,
        out_shape=jax.ShapeDtypeStruct((B, l_out), out_dtype),
        grid_spec=grid_spec,
        compiler_params=pltpu.CompilerParams(
            dimension_semantics=("parallel",),
            vmem_limit_bytes=_vmem_limit(vmem_needed)),
        cost_estimate=cost,
    )(p_flat, x_flat)
    return out_flat.reshape(B, P + S, D)


# ----------------------------------------------------------------------------
# Layout 2: native (B, P+S, D) with a grid axis over 128-lane chunks of D.
# ----------------------------------------------------------------------------
def _forward_chunked(prompt, x, out_dtype, target_step_bytes):
    P, D = prompt.shape
    B, S, _ = x.shape
    itemsize = jnp.dtype(out_dtype).itemsize
    per_lane_row_bytes = (2 * S + P) * itemsize    # in+out bytes / row / lane

    if D % 128 == 0:
        # Largest 128-multiple chunk of D that divides D (no ragged chunk) and
        # keeps a single-row step under the per-step traffic target.
        max_lanes = max(128, target_step_bytes // per_lane_row_bytes)
        dc = 128
        for m in range(2, D // 128 + 1):
            c = 128 * m
            if c > max_lanes:
                break
            if D % c == 0:
                dc = c
    else:
        dc = D        # chunks must be 128-aligned; fall back to the full dim
    n_dc = D // dc
    step_row_bytes = per_lane_row_bytes * dc       # in+out bytes / row / step

    # Batch rows per step: fill the traffic target, but keep >= ~4 total grid
    # steps (pipeline overlap + megacore split) and prefer a tile dividing B.
    bt = max(1, min(B, target_step_bytes // step_row_bytes))
    want_steps = min(4, n_dc * B)
    bt = min(bt, _cdiv(B, _cdiv(want_steps, n_dc)))
    bt = _prefer_divisor(B, bt, step=1)
    while bt > 1 and 2 * bt * step_row_bytes > _BLOCK_BYTES_BUDGET:
        bt = max(1, bt // 2)
    n_bt = _cdiv(B, bt)

    vmem_needed = 2 * (bt * step_row_bytes + P * dc * itemsize)
    bytes_accessed = (B * S * D + P * D + B * (P + S) * D) * itemsize
    cost = pl.CostEstimate(flops=0, transcendentals=0,
                           bytes_accessed=int(bytes_accessed))

    grid_spec = pltpu.PrefetchScalarGridSpec(
        num_scalar_prefetch=0,
        # D-chunk axis outermost so the (tiny) prompt block only changes --
        # and is only re-fetched -- n_dc times; batch axis is the fast axis.
        grid=(n_dc, n_bt),
        in_specs=[
            pl.BlockSpec((P, dc), lambda j, bi: (0, j)),
            pl.BlockSpec((bt, S, dc), lambda j, bi: (bi, 0, j)),
        ],
        out_specs=pl.BlockSpec((bt, P + S, dc), lambda j, bi: (bi, 0, j)),
    )

    return pl.pallas_call(
        _concat_chunked_kernel,
        out_shape=jax.ShapeDtypeStruct((B, P + S, D), out_dtype),
        grid_spec=grid_spec,
        compiler_params=pltpu.CompilerParams(
            dimension_semantics=("parallel", "parallel"),
            vmem_limit_bytes=_vmem_limit(vmem_needed)),
        cost_estimate=cost,
    )(prompt, x)


# ----------------------------------------------------------------------------
# Public entry point.
# ----------------------------------------------------------------------------
def prompt_tuning_forward(prompt_embeddings, inputs_embeds, *,
                          target_step_bytes=_TARGET_STEP_BYTES):
    """concat(broadcast(prompt_embeddings), inputs_embeds, axis=1).

    prompt_embeddings: (P, D);  inputs_embeds: (B, S, D)  ->  (B, P + S, D)
    """
    P, D = prompt_embeddings.shape
    B, S, Dx = inputs_embeds.shape
    assert D == Dx, "embed_dim mismatch"
    # Follow torch.cat type promotion instead of silently downcasting the
    # prompt parameter to the activation dtype.
    out_dtype = jnp.result_type(prompt_embeddings.dtype, inputs_embeds.dtype)
    prompt = prompt_embeddings.astype(out_dtype)
    x = inputs_embeds.astype(out_dtype)

    if D % 128 == 0:
        return _forward_chunked(prompt, x, out_dtype, target_step_bytes)

    # D not lane-aligned: prefer the lane-dense flattened layout as long as its
    # (>= 8 sublane-row) blocks fit the VMEM budget; otherwise fall back to the
    # chunked layout, whose sublane density comes from the seq axis.
    itemsize = jnp.dtype(out_dtype).itemsize
    row_bytes = (S * D + (P + S) * D) * itemsize
    min_bt = B if B <= 8 else 8
    if 2 * min_bt * row_bytes <= _BLOCK_BYTES_BUDGET:
        return _forward_flat(prompt, x, out_dtype, target_step_bytes)
    return _forward_chunked(prompt, x, out_dtype, target_step_bytes)


def _reference(prompt, x):
    B = x.shape[0]
    return jnp.concatenate(
        [jnp.broadcast_to(prompt[None], (B,) + prompt.shape), x], axis=1)


if __name__ == "__main__":
    key = jax.random.PRNGKey(0)
    keys = jax.random.split(key, 6)

    # 1) Module's demo config (embed_dim=32 not lane-aligned -> flat path).
    batch, seq, embed_dim, prompt_length = 2, 8, 32, 10
    prompt_embeddings = jax.random.normal(
        keys[0], (prompt_length, embed_dim), dtype=jnp.float32)
    inputs_embeds = jax.random.normal(
        keys[1], (batch, seq, embed_dim), dtype=jnp.float32)
    out = jax.block_until_ready(
        prompt_tuning_forward(prompt_embeddings, inputs_embeds))
    assert out.shape == (batch, prompt_length + seq, embed_dim)
    assert jnp.array_equal(out, _reference(prompt_embeddings, inputs_embeds))

    # 2) Lane-aligned embed_dim -> chunked (B, P+S, D) path; a small per-step
    #    target forces multiple D chunks so the chunk index maps are exercised.
    p2 = jax.random.normal(keys[2], (10, 256), dtype=jnp.float32)
    x2 = jax.random.normal(keys[3], (4, 16, 256), dtype=jnp.float32)
    out2 = jax.block_until_ready(
        prompt_tuning_forward(p2, x2, target_step_bytes=32 * 1024))
    assert out2.shape == (4, 26, 256)
    assert jnp.array_equal(out2, _reference(p2, x2))

    # 3) B > 8 on the flat path -> multi-step batch grid with 8-row tiles.
    p3 = jax.random.normal(keys[4], (10, 32), dtype=jnp.float32)
    x3 = jax.random.normal(keys[5], (16, 8, 32), dtype=jnp.float32)
    out3 = jax.block_until_ready(
        prompt_tuning_forward(p3, x3, target_step_bytes=4 * 1024))
    assert out3.shape == (16, 18, 32)
    assert jnp.array_equal(out3, _reference(p3, x3))

    print("KERNEL_OK")
</pallas_src>

<mosaic_0001>
module attributes {stable_mosaic.version = 11 : i64} {
  func.func @_concat_flat_kernel(%arg0: i32, %arg1: memref<1x320xf32, #tpu.memory_space<vmem>>, %arg2: memref<2x256xf32, #tpu.memory_space<vmem>>, %arg3: memref<2x576xf32, #tpu.memory_space<vmem>>) attributes {dimension_semantics = [#tpu.dimension_semantics<parallel>], iteration_bounds = array<i64: 1>, scalar_prefetch = 0 : i64, scratch_operands = 0 : i64, tpu.core_type = #tpu.core_type<tc>, window_params = [{pipeline_mode = #tpu.pipeline_mode<synchronous>, transform_indices = @transform_0, window_bounds = array<i64: 1, 320>}, {transform_indices = @transform_1, window_bounds = array<i64: 2, 256>}, {transform_indices = @transform_2, window_bounds = array<i64: 2, 576>}]} {
    %c0 = arith.constant 0 : index
    %c0_0 = arith.constant 0 : index
    %0 = vector.load %arg1[%c0, %c0_0] : memref<1x320xf32, #tpu.memory_space<vmem>>, vector<1x320xf32>
    %1 = vector.shape_cast %0 : vector<1x320xf32> to vector<1x320xf32>
    %2 = vector.broadcast %1 : vector<1x320xf32> to vector<2x320xf32>
    %c0_1 = arith.constant 0 : index
    %c0_2 = arith.constant 0 : index
    %3 = vector.load %arg3[%c0_1, %c0_2] : memref<2x576xf32, #tpu.memory_space<vmem>>, vector<2x320xf32>
    tpu.vector_store %arg3[%c0_1, %c0_2], %2 {strides = array<i32>} : memref<2x576xf32, #tpu.memory_space<vmem>>, vector<2x320xf32>,
    %c0_3 = arith.constant 0 : index
    %c0_4 = arith.constant 0 : index
    %4 = vector.load %arg2[%c0_3, %c0_4] : memref<2x256xf32, #tpu.memory_space<vmem>>, vector<2x256xf32>
    %c0_5 = arith.constant 0 : index
    %c320 = arith.constant 320 : index
    %5 = vector.load %arg3[%c0_5, %c320] : memref<2x576xf32, #tpu.memory_space<vmem>>, vector<2x256xf32>
    tpu.vector_store %arg3[%c0_5, %c320], %4 {strides = array<i32>} : memref<2x576xf32, #tpu.memory_space<vmem>>, vector<2x256xf32>,
    return
  }
  func.func @transform_0(%arg0: i32) -> (i32, i32) {
    %c0_i32 = arith.constant 0 : i32
    %c0_i32_0 = arith.constant 0 : i32
    %c0_i32_1 = arith.constant 0 : i32
    return %c0_i32, %c0_i32_0 : i32, i32
  }
  func.func @transform_1(%arg0: i32) -> (i32, i32) {
    %c0_i32 = arith.constant 0 : i32
    %c0_i32_0 = arith.constant 0 : i32
    return %arg0, %c0_i32 : i32, i32
  }
  func.func @transform_2(%arg0: i32) -> (i32, i32) {
    %c0_i32 = arith.constant 0 : i32
    %c0_i32_0 = arith.constant 0 : i32
    return %arg0, %c0_i32 : i32, i32
  }
}

</mosaic_0001>

<bundles_post_ra>
// kernel: tpu_custom_call.1
= control target key start
LH: loop header
LB: loop body
LE: loop exit
PB: predicated region body
PF: predicated region fallthrough
CT: control target
= control target key end

     0   :  { %7 = vsyncpa [#allocation3], 0  ;;  %s244_s0 = inlined_call_operand.hbm [shape: f32[1,320], index: 0, kind: input, shape index: {}]   ;;  %s245_s1 = inlined_call_operand.hbm [shape: f32[2,256], index: 1, kind: input, shape index: {}]   ;;  %s246_s2 = inlined_call_operand.hbm [shape: f32[2,576], index: 2, kind: output, shape index: {}]  }
   0x1   :  { %8 = vsyncpa [#allocation6], 0 }
   0x2   :  { %9 = vsyncpa [#allocation4], 0  ;;  %s178_s9 = smov [#allocation2]   ;;  %s179_s11 = smov [#allocation5]  }
   0x3   :  { %s16_s10 = sshll.u32 %s178_s9, 4  ;;  %s26_s12 = sshll.u32 %s179_s11, 4  ;;  %s17_s10 = int_to_ptr.vmem [resolvable:$true] %s16_s10  ;;  %s27_s12 = int_to_ptr.vmem [resolvable:$true] %s26_s12 }
   0x4   :  { %s106_s15 = scalar_lea.hbm %s244_s0, 48 }
   0x5   :  { %p107_p0 = scmp.ne.s32.totalorder %s244_s0, %s106_s15  ;;  %p110_p1 = scmp.lt.u32.totalorder %s106_s15, %s244_s0 }
   0x7   :  { %p112_p2 = pnand %p110_p1, %p107_p0 }
   0x9   :  { %115 = shalt.err (!%p112_p2)
}
   0xa   :  { %s116_s20 = scalar_lea.vmem %s17_s10, 48  ;;  %s120_s21 = scalar_lea.vmem %s17_s10, 64 }
   0xb   :  { %p117_p3 = scmp.ne.s32.totalorder %s17_s10, %s116_s20  ;;  %p121_p4 = scmp.lt.s32.totalorder %s17_s10, %s17_s10 }
   0xc   :  { %p122_p5 = scmp.lt.s32.totalorder %s120_s21, %s116_s20 }
   0xe   :  { %p123_p6 = por %p122_p5, %p121_p4 }
  0x10   :  { %p124_p7 = pnand %p123_p6, %p117_p3 }
  0x12   :  { %127 = shalt.err (!%p124_p7)
}
  0x13   :  { %19 = dma.hbm_to_vmem [thread:$0]  %s244_s0, 48, %s17_s10, [#allocation3]  }
  0x14   :  { %s128_s26 = scalar_lea.hbm %s245_s1, 64 }
  0x15   :  { %p129_p8 = scmp.ne.s32.totalorder %s245_s1, %s128_s26  ;;  %p132_p9 = scmp.lt.u32.totalorder %s128_s26, %s245_s1 }
  0x17   :  { %p134_p10 = pnand %p132_p9, %p129_p8 }
  0x19   :  { %137 = shalt.err (!%p134_p10)
}
  0x1a   :  { %s138_s3 = scalar_lea.vmem %s27_s12, 64  ;;  %p143_p12 = scmp.lt.s32.totalorder %s27_s12, %s27_s12 }
  0x1b   :  { %p139_p11 = scmp.ne.s32.totalorder %s27_s12, %s138_s3  ;;  %p144_p13 = scmp.lt.s32.totalorder %s138_s3, %s138_s3 }
  0x1d   :  { %p145_p0 = por %p144_p13, %p143_p12 }
  0x1f   :  { %p146_p1 = pnand %p145_p0, %p139_p11 }
  0x21   :  { %149 = shalt.err (!%p146_p1)
}
  0x22   :  { %29 = dma.hbm_to_vmem [thread:$0]  %s245_s1, 64, %s27_s12, [#allocation6]  }
  0x23   :  { %172 = dma.done.wait [#allocation3], 48  }
  0x24   :  { %173 = vsyncadd [#allocation3], 4294967248 }
  0x25   :  { %174 = dma.done.wait [#allocation6], 64  }
  0x26   :  { %175 = vsyncadd [#allocation6], 4294967232  ;;  %v38_v0 = vlaneseq  ;;  %v180_v1 = vmov 1983009808   ;;  %vm68_vm0 = vcmask 1043458   ;;  %vm70_vm1 = vcmask 521220  }
  0x27   :  { %v52_v2 = vunpack.c.l.s4 %v180_v1  ;;  %vm81_vm2 = vcmask 1041920   ;;  %v73_v10 = vld [vmem:[#allocation5] sm:$0xf]  ;;  %v36_v11 = vld [vmem:[#allocation2] sm:$0x7]  ;;  %vm67_vm5 = vcmask 1041408  }
  0x28   :  { %v39_v3 = vshrl.u32 %v38_v0, 7  ;;  %vm82_vm3 = vmor %vm68_vm0, %vm81_vm2  ;;  %s181_s1 = smov 64   ;;  %s182_s5 = smov [#allocation7]   ;;  %vm78_vm8 = vcmask 523264  }
  0x29   :  { %v53_v4 = vunpack.c.0.s8 %v52_v2  ;;  %vm224_vm4 = vmor %vm70_vm1, %vm82_vm3  ;;  %75 = vrot.lane.b32.xlu0 %v73_v10, %s181_s1  ;;  %s91_s6 = sshll.u32 %s182_s5, 4  ;;  %s92_s6 = int_to_ptr.vmem [resolvable:$true] %s91_s6 }
  0x2a   :  { %v40_v5 = vsub.s32 0, %v39_v3  ;;  %v44_v6 = vsub.s32 1, %v39_v3  ;;  %v48_v7 = vsub.s32 2, %v39_v3  ;;  %vm69_vm6 = vmor %vm68_vm0, %vm67_vm5  ;;  %s150_s7 = scalar_lea.vmem %s92_s6, 160  ;;  %p155_p3 = scmp.lt.s32.totalorder %s92_s6, %s92_s6 }
  0x2b   :  { %v56_v9 = vsub.s32 %v53_v4, %v39_v3  ;;  %vm71_vm7 = vmor %vm70_vm1, %vm69_vm6  ;;  %p151_p2 = scmp.ne.s32.totalorder %s92_s6, %s150_s7  ;;  %p156_p4 = scmp.lt.s32.totalorder %s150_s7, %s150_s7 }
  0x2c   :  { %v41_v12 = vrot.slane %v36_v11, %v40_v5  ;;  %v45_v13 = vrot.slane %v36_v11, %v44_v6  ;;  %v49_v14 = vrot.slane %v36_v11, %v48_v7 }
  0x2d   :  { %p157_p5 = por %p156_p4, %p155_p3 }
  0x2e   :  { %v50_v15 = vcombine.low %v41_v12, %v45_v13  ;;  %v64_v16 = vrot.slane %v49_v14, %v56_v9 }
  0x2f   :  { %p158_p6 = pnand %p157_p5, %p151_p2 }
  0x30   :  { %v57_v17 = vrot.slane %v50_v15, %v56_v9 }
  0x32   :  { %v65_v18 = vcombine.low %v57_v17, %v64_v16 }
  0x34   :  { %72 = vst.msk [vmem:[#allocation7] sm:$0x3f] %vm71_vm7, %v65_v18 }
  0x9b   :  { %v76_v19 = vpop.permute.xlu0 %75 }
  0x9c   :  { %v77_v20 = vrot.slane %v76_v19, 6 }
  0x9e   :  { %v79_v21 = vsel %vm78_vm8, %v77_v20, %v76_v19 }
  0x9f   :  { %84 = vst.msk [vmem:[#allocation7 + $0x4] sm:$0x3f] %vm224_vm4, %v79_v21 }
  0xa0   :  { %161 = shalt.err (!%p158_p6)
}
  0xa1   :  { %s162_s10 = scalar_lea.hbm %s246_s2, 160 }
  0xa2   :  { %p163_p7 = scmp.ne.s32.totalorder %s246_s2, %s162_s10  ;;  %p166_p8 = scmp.lt.u32.totalorder %s162_s10, %s246_s2 }
  0xa4   :  { %p168_p9 = pnand %p166_p8, %p163_p7 }
  0xa6   :  { %171 = shalt.err (!%p168_p9)
}
  0xa7   :  { %94 = dma.vmem_to_hbm [thread:$0]  %s92_s6, 160, %s246_s2, [#allocation4]  }
  0xa8   :  { %176 = dma.done.wait [#allocation4], 160  }
  0xa9   :  { %177 = vsyncadd [#allocation4], 4294967136 }
  0xaa   :  { %98 = vsyncpa [#allocation3], 1 }
  0xab   :  { %99 = vsyncpa [#allocation6], 1 }
  0xac   :  { %100 = vsyncpa [#allocation4], 1 }

</bundles_post_ra>
